<compile_context>
chip_gen: v7x
topology: tpu7x:2x2x1
jax: 0.10.0
libtpu: 0.0.40
codegen_flags: <defaults>
</compile_context>

<pallas_src>
import jax
import jax.numpy as jnp
from jax.experimental import pallas as pl
from jax.experimental.pallas import tpu as pltpu


def _rsvp_kernel(x_ref, w1_ref, b1_ref, w2_ref, b2_ref, w3_ref, b3_ref, o_ref):
    # Cast the x tile to the MXU operand dtype in-kernel (cheap VPU work that
    # co-issues next to DMA/MXU; avoids a wrapper-side extra HBM pass over x).
    x = x_ref[...].astype(w1_ref.dtype)

    # Layer 1: Linear(D -> 128) + ReLU   (dropout = identity in eval mode).
    h1 = jnp.dot(x, w1_ref[...], preferred_element_type=jnp.float32)
    h1 = jnp.maximum(h1 + b1_ref[...], 0.0)

    # Layer 2: Linear(128 -> 64) + ReLU. Cast activation to the weight dtype
    # (no-op in f32 mode, keeps the bf16 MXU path in bf16 mode).
    h2 = jnp.dot(h1.astype(w2_ref.dtype), w2_ref[...],
                 preferred_element_type=jnp.float32)
    h2 = jnp.maximum(h2 + b2_ref[...], 0.0)

    # Layer 3: Linear(64 -> 20) + Sigmoid (EUP), then + 0.5.
    h3 = jnp.dot(h2.astype(w3_ref.dtype), w3_ref[...],
                 preferred_element_type=jnp.float32)
    h3 = h3 + b3_ref[...]
    o_ref[...] = (jax.nn.sigmoid(h3) + 0.5).astype(o_ref.dtype)


def _vmem_estimate_bytes(tm, D, out_dim, x_isz, c_isz, o_isz, x_buffers):
    """Rough per-grid-step VMEM footprint: resident weights + pipelined tiles."""
    weights = (D * 128 + 128 * 64 + 64 * out_dim) * c_isz
    biases = (128 + 64 + out_dim) * 4
    x_buf = x_buffers * tm * D * x_isz            # input pipeline buffers
    out_buf = 2 * tm * out_dim * o_isz            # output double buffer
    acts = tm * (128 + 64 + out_dim) * (4 + c_isz)  # f32 h1/h2/h3 + casts
    return weights + biases + x_buf + out_buf + acts


def rsvp_forward(x, params, *, block_rows=512, compute_dtype=jnp.bfloat16,
                 out_dtype=jnp.float32, x_buffers=2,
                 vmem_budget_bytes=12 * 1024 * 1024):
    """Fused MLP forward.

    x: (B, D) array (any float dtype; cast to compute_dtype inside the kernel).
    Returns (B, 20) in out_dtype (f32 by default, matching the PyTorch module).
    block_rows: requested batch-tile size; the actual tile is additionally
        capped at ~B//4 (>=4 grid steps for pipelining / v7x megacore), rounded
        to a multiple of 16, and shrunk to fit vmem_budget_bytes.
    compute_dtype: dtype of matmul operands (bf16 default). Accumulation,
        bias, ReLU and sigmoid always run in f32.
    x_buffers: input pipeline depth (2 = standard double buffer; 3 hides more
        DMA latency at the cost of one extra (tm, D) VMEM buffer).
    """
    w1, b1, w2, b2, w3, b3 = params
    B, D = x.shape
    out_dim = w3.shape[1]

    # Cast the (small, VMEM-resident) weights only; x stays in its caller
    # dtype -- the per-tile cast happens inside the kernel. Biases stay f32.
    w1_c = w1.astype(compute_dtype)
    w2_c = w2.astype(compute_dtype)
    w3_c = w3.astype(compute_dtype)

    x_isz = jnp.dtype(x.dtype).itemsize
    c_isz = jnp.dtype(compute_dtype).itemsize
    o_isz = jnp.dtype(out_dtype).itemsize

    # ---- batch-tile size ---------------------------------------------------
    tm = min(block_rows, B)
    # Guarantee >= 4 grid steps when the batch is big enough: DMA/compute
    # overlap and work for both v7x TensorCores on the "parallel" axis.
    if B >= 4 * 16:
        tm = min(tm, B // 4)
    if tm < B:
        tm = max(16, (tm // 16) * 16)            # 16-align (bf16 sublane packing)
    # Shrink the tile until it (plus resident weights) fits the VMEM budget.
    while tm > 16 and _vmem_estimate_bytes(
            tm, D, out_dim, x_isz, c_isz, o_isz, x_buffers) > vmem_budget_bytes:
        tm = max(16, ((tm // 2) // 16) * 16)
    grid = (pl.cdiv(B, tm),)

    vmem_est = _vmem_estimate_bytes(tm, D, out_dim, x_isz, c_isz, o_isz, x_buffers)
    # Explicit scoped-VMEM limit: generous headroom over the estimate, never
    # below the v5e default (16 MiB), never above a safe 96 MiB cap.
    vmem_limit = int(min(max(4 * vmem_est, 16 * 1024 * 1024), 96 * 1024 * 1024))

    # ---- BlockSpecs ----------------------------------------------------------
    # x / out: tiled over batch rows, pipelined by Pallas.
    if x_buffers == 2:
        x_spec = pl.BlockSpec((tm, D), lambda i: (i, 0))
    else:
        x_spec = pl.BlockSpec((tm, D), lambda i: (i, 0),
                              pipeline_mode=pl.Buffered(x_buffers))
    # Weights/biases: full-array blocks with constant index_map -> DMA'd once,
    # VMEM-resident across all grid steps.
    def resident(a):
        return pl.BlockSpec(a.shape, lambda i: (0,) * a.ndim)

    # Output is kept 20 lanes wide on purpose (see header comment).
    out_spec = pl.BlockSpec((tm, out_dim), lambda i: (i, 0))

    flops = 2 * B * (D * 128 + 128 * 64 + 64 * out_dim)
    bytes_accessed = (
        B * D * x_isz                                      # x read
        + B * out_dim * o_isz                              # output write
        + (D * 128 + 128 * 64 + 64 * out_dim) * c_isz      # weights
        + (128 + 64 + out_dim) * 4                         # biases (f32)
    )
    cost = pl.CostEstimate(flops=flops,
                           transcendentals=B * out_dim,    # sigmoid
                           bytes_accessed=bytes_accessed)

    return pl.pallas_call(
        _rsvp_kernel,
        out_shape=jax.ShapeDtypeStruct((B, out_dim), out_dtype),
        grid=grid,
        in_specs=[
            x_spec,
            resident(w1_c), resident(b1),
            resident(w2_c), resident(b2),
            resident(w3_c), resident(b3),
        ],
        out_specs=out_spec,
        compiler_params=pltpu.CompilerParams(
            dimension_semantics=("parallel",),   # batch blocks are independent
            vmem_limit_bytes=vmem_limit,
        ),
        cost_estimate=cost,
    )(x, w1_c, b1, w2_c, b2, w3_c, b3)


def init_params(key, input_dim):
    """Deterministic parameter init (PyTorch-style uniform fan-in bounds)."""
    dims = [(input_dim, 128), (128, 64), (64, 20)]
    params = []
    for i, (fan_in, fan_out) in enumerate(dims):
        kw, kb = jax.random.split(jax.random.fold_in(key, i))
        bound = 1.0 / (fan_in ** 0.5)
        w = jax.random.uniform(kw, (fan_in, fan_out), jnp.float32, -bound, bound)
        b = jax.random.uniform(kb, (1, fan_out), jnp.float32, -bound, bound)
        params.extend([w, b])
    return tuple(params)


def rsvp_reference(x, params):
    """Pure-JAX reference for correctness checking."""
    w1, b1, w2, b2, w3, b3 = params
    h = jnp.maximum(x @ w1 + b1, 0.0)
    h = jnp.maximum(h @ w2 + b2, 0.0)
    return jax.nn.sigmoid(h @ w3 + b3) + 0.5


if __name__ == "__main__":
    key = jax.random.PRNGKey(0)
    batch, input_dim = 64, 32

    k_x, k_p = jax.random.split(key)
    x = jax.random.normal(k_x, (batch, input_dim), jnp.float32)
    params = init_params(k_p, input_dim)
    ref = rsvp_reference(x, params)

    # 1) Default perf path: bf16 operands (in-kernel cast of x), auto-tiled
    #    tm=16 -> 4 pipelined "parallel" grid steps.
    out = jax.block_until_ready(rsvp_forward(x, params))
    assert out.shape == (batch, 20), out.shape
    assert jnp.allclose(out, ref, atol=5e-2, rtol=5e-2), "bf16 default mismatch"

    # 2) f32 operand path, tight tolerance against the pure-JAX reference.
    out_f32 = jax.block_until_ready(
        rsvp_forward(x, params, compute_dtype=jnp.float32))
    assert jnp.allclose(out_f32, ref, atol=1e-5, rtol=1e-5), "f32 mismatch"

    # 3) Deeper input pipeline (3-buffered x DMA), bf16.
    out_b3 = jax.block_until_ready(rsvp_forward(x, params, x_buffers=3))
    assert jnp.allclose(out_b3, ref, atol=5e-2, rtol=5e-2), "buffered-3 mismatch"

    # 4) bf16 output (halves writeback bytes) against the reference.
    out_bf16o = jax.block_until_ready(
        rsvp_forward(x, params, out_dtype=jnp.bfloat16))
    assert jnp.allclose(out_bf16o.astype(jnp.float32), ref,
                        atol=5e-2, rtol=5e-2), "bf16-out mismatch"

    print("KERNEL_OK")
</pallas_src>

<mosaic_0001>
module attributes {stable_mosaic.version = 11 : i64} {
  func.func @_rsvp_kernel(%arg0: i32, %arg1: memref<16x32xf32, #tpu.memory_space<vmem>>, %arg2: memref<32x128xbf16, #tpu.memory_space<vmem>>, %arg3: memref<1x128xf32, #tpu.memory_space<vmem>>, %arg4: memref<128x64xbf16, #tpu.memory_space<vmem>>, %arg5: memref<1x64xf32, #tpu.memory_space<vmem>>, %arg6: memref<64x20xbf16, #tpu.memory_space<vmem>>, %arg7: memref<1x20xf32, #tpu.memory_space<vmem>>, %arg8: memref<16x20xf32, #tpu.memory_space<vmem>>) attributes {dimension_semantics = [#tpu.dimension_semantics<parallel>], iteration_bounds = array<i64: 4>, scalar_prefetch = 0 : i64, scratch_operands = 0 : i64, tpu.core_type = #tpu.core_type<tc>, window_params = [{transform_indices = @transform_0, window_bounds = array<i64: 16, 32>}, {pipeline_mode = #tpu.pipeline_mode<synchronous>, transform_indices = @transform_1, window_bounds = array<i64: 32, 128>}, {pipeline_mode = #tpu.pipeline_mode<synchronous>, transform_indices = @transform_2, window_bounds = array<i64: 1, 128>}, {pipeline_mode = #tpu.pipeline_mode<synchronous>, transform_indices = @transform_3, window_bounds = array<i64: 128, 64>}, {pipeline_mode = #tpu.pipeline_mode<synchronous>, transform_indices = @transform_4, window_bounds = array<i64: 1, 64>}, {pipeline_mode = #tpu.pipeline_mode<synchronous>, transform_indices = @transform_5, window_bounds = array<i64: 64, 20>}, {pipeline_mode = #tpu.pipeline_mode<synchronous>, transform_indices = @transform_6, window_bounds = array<i64: 1, 20>}, {transform_indices = @transform_7, window_bounds = array<i64: 16, 20>}]} {
    %c0 = arith.constant 0 : index
    %c0_0 = arith.constant 0 : index
    %0 = vector.load %arg1[%c0, %c0_0] : memref<16x32xf32, #tpu.memory_space<vmem>>, vector<16x32xf32>
    %1 = arith.truncf %0 : vector<16x32xf32> to vector<16x32xbf16>
    %c0_1 = arith.constant 0 : index
    %c0_2 = arith.constant 0 : index
    %2 = vector.load %arg2[%c0_1, %c0_2] : memref<32x128xbf16, #tpu.memory_space<vmem>>, vector<32x128xbf16>
    %cst = arith.constant dense<0.000000e+00> : vector<16x128xf32>
    %3 = tpu.matmul %1, %2, %cst {dimension_numbers = #tpu.dot_dimension_numbers<[1], [0], [0], [1], [0, 0, 1, 1], [], []>} : vector<16x32xbf16>, vector<32x128xbf16>, vector<16x128xf32> -> vector<16x128xf32>
    %c0_3 = arith.constant 0 : index
    %c0_4 = arith.constant 0 : index
    %4 = vector.load %arg3[%c0_3, %c0_4] : memref<1x128xf32, #tpu.memory_space<vmem>>, vector<1x128xf32>
    %5 = vector.broadcast %4 : vector<1x128xf32> to vector<16x128xf32>
    %6 = arith.addf %3, %5 : vector<16x128xf32>
    %cst_5 = arith.constant 0.000000e+00 : f32
    %7 = vector.broadcast %cst_5 : f32 to vector<16x128xf32>
    %8 = arith.maximumf %6, %7 : vector<16x128xf32>
    %9 = arith.truncf %8 : vector<16x128xf32> to vector<16x128xbf16>
    %c0_6 = arith.constant 0 : index
    %c0_7 = arith.constant 0 : index
    %10 = vector.load %arg4[%c0_6, %c0_7] : memref<128x64xbf16, #tpu.memory_space<vmem>>, vector<128x64xbf16>
    %cst_8 = arith.constant dense<0.000000e+00> : vector<16x64xf32>
    %11 = tpu.matmul %9, %10, %cst_8 {dimension_numbers = #tpu.dot_dimension_numbers<[1], [0], [0], [1], [0, 0, 1, 1], [], []>} : vector<16x128xbf16>, vector<128x64xbf16>, vector<16x64xf32> -> vector<16x64xf32>
    %c0_9 = arith.constant 0 : index
    %c0_10 = arith.constant 0 : index
    %12 = vector.load %arg5[%c0_9, %c0_10] : memref<1x64xf32, #tpu.memory_space<vmem>>, vector<1x64xf32>
    %13 = vector.broadcast %12 : vector<1x64xf32> to vector<16x64xf32>
    %14 = arith.addf %11, %13 : vector<16x64xf32>
    %cst_11 = arith.constant 0.000000e+00 : f32
    %15 = vector.broadcast %cst_11 : f32 to vector<16x64xf32>
    %16 = arith.maximumf %14, %15 : vector<16x64xf32>
    %17 = arith.truncf %16 : vector<16x64xf32> to vector<16x64xbf16>
    %c0_12 = arith.constant 0 : index
    %c0_13 = arith.constant 0 : index
    %18 = vector.load %arg6[%c0_12, %c0_13] : memref<64x20xbf16, #tpu.memory_space<vmem>>, vector<64x20xbf16>
    %cst_14 = arith.constant dense<0.000000e+00> : vector<16x20xf32>
    %19 = tpu.matmul %17, %18, %cst_14 {dimension_numbers = #tpu.dot_dimension_numbers<[1], [0], [0], [1], [0, 0, 1, 1], [], []>} : vector<16x64xbf16>, vector<64x20xbf16>, vector<16x20xf32> -> vector<16x20xf32>
    %c0_15 = arith.constant 0 : index
    %c0_16 = arith.constant 0 : index
    %20 = vector.load %arg7[%c0_15, %c0_16] : memref<1x20xf32, #tpu.memory_space<vmem>>, vector<1x20xf32>
    %21 = vector.broadcast %20 : vector<1x20xf32> to vector<16x20xf32>
    %22 = arith.addf %19, %21 : vector<16x20xf32>
    %23 = arith.negf %22 : vector<16x20xf32>
    %24 = math.exp %23 : vector<16x20xf32>
    %cst_17 = arith.constant 1.000000e+00 : f32
    %25 = vector.broadcast %cst_17 : f32 to vector<16x20xf32>
    %26 = arith.addf %25, %24 : vector<16x20xf32>
    %27 = arith.divf %25, %26 : vector<16x20xf32>
    %cst_18 = arith.constant 5.000000e-01 : f32
    %28 = vector.broadcast %cst_18 : f32 to vector<16x20xf32>
    %29 = arith.addf %27, %28 : vector<16x20xf32>
    %c0_19 = arith.constant 0 : index
    %c0_20 = arith.constant 0 : index
    %30 = vector.load %arg8[%c0_19, %c0_20] : memref<16x20xf32, #tpu.memory_space<vmem>>, vector<16x20xf32>
    tpu.vector_store %arg8[%c0_19, %c0_20], %29 {strides = array<i32>} : memref<16x20xf32, #tpu.memory_space<vmem>>, vector<16x20xf32>,
    return
  }
  func.func @transform_0(%arg0: i32) -> (i32, i32) {
    %c0_i32 = arith.constant 0 : i32
    %c0_i32_0 = arith.constant 0 : i32
    return %arg0, %c0_i32 : i32, i32
  }
  func.func @transform_1(%arg0: i32) -> (i32, i32) {
    %c0_i32 = arith.constant 0 : i32
    %c0_i32_0 = arith.constant 0 : i32
    %c0_i32_1 = arith.constant 0 : i32
    return %c0_i32, %c0_i32_0 : i32, i32
  }
  func.func @transform_2(%arg0: i32) -> (i32, i32) {
    %c0_i32 = arith.constant 0 : i32
    %c0_i32_0 = arith.constant 0 : i32
    %c0_i32_1 = arith.constant 0 : i32
    return %c0_i32, %c0_i32_0 : i32, i32
  }
  func.func @transform_3(%arg0: i32) -> (i32, i32) {
    %c0_i32 = arith.constant 0 : i32
    %c0_i32_0 = arith.constant 0 : i32
    %c0_i32_1 = arith.constant 0 : i32
    return %c0_i32, %c0_i32_0 : i32, i32
  }
  func.func @transform_4(%arg0: i32) -> (i32, i32) {
    %c0_i32 = arith.constant 0 : i32
    %c0_i32_0 = arith.constant 0 : i32
    %c0_i32_1 = arith.constant 0 : i32
    return %c0_i32, %c0_i32_0 : i32, i32
  }
  func.func @transform_5(%arg0: i32) -> (i32, i32) {
    %c0_i32 = arith.constant 0 : i32
    %c0_i32_0 = arith.constant 0 : i32
    %c0_i32_1 = arith.constant 0 : i32
    return %c0_i32, %c0_i32_0 : i32, i32
  }
  func.func @transform_6(%arg0: i32) -> (i32, i32) {
    %c0_i32 = arith.constant 0 : i32
    %c0_i32_0 = arith.constant 0 : i32
    %c0_i32_1 = arith.constant 0 : i32
    return %c0_i32, %c0_i32_0 : i32, i32
  }
  func.func @transform_7(%arg0: i32) -> (i32, i32) {
    %c0_i32 = arith.constant 0 : i32
    %c0_i32_0 = arith.constant 0 : i32
    return %arg0, %c0_i32 : i32, i32
  }
}

</mosaic_0001>

<bundles_post_ra>
// kernel: tpu_custom_call.1
= control target key start
LH: loop header
LB: loop body
LE: loop exit
PB: predicated region body
PF: predicated region fallthrough
CT: control target
= control target key end

     0   :  { %s800_s24 = smov 0   ;;  %s895_s0 = inlined_call_operand.vmem [shape: f32[64,32], index: 0, kind: input, shape index: {}]   ;;  %s896_s1 = inlined_call_operand.vmem [shape: bf16[32,128], index: 1, kind: input, shape index: {}]   ;;  %s897_s2 = inlined_call_operand.vmem [shape: f32[1,128], index: 2, kind: input, shape index: {}]   ;;  %s898_s3 = inlined_call_operand.vmem [shape: bf16[128,64], index: 3, kind: input, shape index: {}]   ;;  %s899_s4 = inlined_call_operand.vmem [shape: f32[1,64], index: 4, kind: input, shape index: {}]   ;;  %s900_s5 = inlined_call_operand.vmem [shape: bf16[64,20], index: 5, kind: input, shape index: {}]   ;;  %s901_s6 = inlined_call_operand.vmem [shape: f32[1,20], index: 6, kind: input, shape index: {}]   ;;  %s902_s7 = inlined_call_operand.vmem [shape: f32[64,20], index: 7, kind: output, shape index: {}]  }
   0x1 LB: > { %s629_s25 = sadd.s32 4294967295, %s756_s24   ;;  %p633_p0 = scmp.ge.s32.totalorder %s756_s24, 1  ;;  %s756_s24 = sphi %s800_s24, %s17_s24  }
   0x2   : > { %p238_p1 = scmp.lt.s32.totalorder %s756_s24, 5 }
   0x4   : > { %p239_p2 = pnand %p633_p0, %p238_p1 }
   0x5   : > { %v728_v0 = vld [vmem:[%s896_s1] sm:$0xff] (!%p239_p2)   ;;  %v758_v1 = vmov (!%p239_p2), 0.0   ;;  %v729_v2 = vld [vmem:[%s896_s1 + $0x8] sm:$0xff] (!%p239_p2)   ;;  %vm759_vm0 = vmmov (!%p239_p2), 0   ;;  %s634_s30 = sshll.u32 (!%p239_p2), %s629_s25, 1  ;;  %v732_v5 = vld [vmem:[%s898_s3 + $0x10] sm:$0xff] (!%p239_p2)  }
   0x6   : > { %242 = sbr.rel (%p239_p2) target bundleno = 704 (0x2c0), region = 48  ;;  %678 = vmatprep.subr.bf16.mxu0 (!%p239_p2), %v758_v1  ;;  %686 = vmatprep.subr.bf16.mxu1 (!%p239_p2), %v758_v1  ;;  %p271_p3 = scmp.lt.s32.totalorder (!%p239_p2), %s634_s30, 7  ;;  %v730_v3 = vld [vmem:[%s898_s3] sm:$0xff] (!%p239_p2)   ;;  %v731_v4 = vld [vmem:[%s898_s3 + $0x8] sm:$0xff] (!%p239_p2)   ;;  %vm309_vm1 = vcmask (!%p239_p2), 261120   ;;  %v733_v9 = vld [vmem:[%s898_s3 + $0x18] sm:$0xff] (!%p239_p2)  }
   0x7   : > { %679 = vmatpush3.bf16.msra.mxu0 (!%p239_p2), %v728_v0  ;;  %682 = vmatprep.mubr.msk.bf16.mxu0 (!%p239_p2), %vm759_vm0, %v758_v1  ;;  %v734_v10 = vld [vmem:[%s898_s3 + $0x20] sm:$0xff] (!%p239_p2)   ;;  %v735_v11 = vld [vmem:[%s898_s3 + $0x28] sm:$0xff] (!%p239_p2)   ;;  %v736_v12 = vld [vmem:[%s898_s3 + $0x30] sm:$0xff] (!%p239_p2)   ;;  %vm511_vm2 = vcmask (!%p239_p2), 523264   ;;  %vm570_vm3 = vcmask (!%p239_p2), 162816  }
   0x8   : > { %680 = vmatprep.subr.bf16.mxu0 (!%p239_p2), %v758_v1  ;;  %702 = vmatprep.mubr.msk.bf16.mxu1 (!%p239_p2), %vm759_vm0, %v758_v1  ;;  %v737_v13 = vld [vmem:[%s898_s3 + $0x38] sm:$0xff] (!%p239_p2)   ;;  %v738_v14 = vld [vmem:[%s900_s5] sm:$0xff] (!%p239_p2)   ;;  %v739_v15 = vld [vmem:[%s900_s5 + $0x8] sm:$0xff] (!%p239_p2)  }
   0x9   : > { %687 = vmatpush3.bf16.msra.mxu1 (!%p239_p2), %v730_v3  ;;  %v638_v16 = vld [vmem:[%s897_s2] ss:$0 sm:$0xff] (!%p239_p2)  ;;  %v740_v26 = vld [vmem:[%s900_s5 + $0x10] sm:$0xff] (!%p239_p2)   ;;  %v741_v27 = vld [vmem:[%s900_s5 + $0x18] sm:$0xff] (!%p239_p2)  }
   0xa   : > { %688 = vmatprep.subr.bf16.mxu1 (!%p239_p2), %v758_v1  ;;  %v642_v28 = vld [vmem:[%s899_s4] ss:$0 sm:$0xff] (!%p239_p2) }
   0xb   : > { %681 = vmatpush3.bf16.msra.mxu0 (!%p239_p2), %v729_v2  ;;  %v651_v38 = vld [vmem:[%s901_s6] ss:$0 sm:$0xff] (!%p239_p2) }
   0xc   : > { %706 = vmatprep.subr.bf16.mxu0 (!%p239_p2), %v758_v1 }
   0xd   : > { %s904_s30 = smov (!%p271_p3, %s634_s30), 7  ;;  %689 = vmatpush3.bf16.msra.mxu1 %v731_v4 }
   0xe   : > { %s635_s12 = sshll.u32 %s904_s30, 3  ;;  %690 = vmatprep.subr.bf16.mxu1 %v758_v1 }
   0xf   : > { %s274_s15 = scalar_lea.vmem %s895_s0, %s635_s12  ;;  %s280_s25 = scalar_lea.vmem %s902_s7, %s635_s12 }
  0x10   : > { %v283_v6 = vld [vmem:[%s274_s15] sm:$0xff]  ;;  %v284_v7 = vld [vmem:[%s274_s15 + $0x8] sm:$0xff] }
  0x11   : > { %v285_v8 = vpack.c.bf16 %v284_v7, %v283_v6  ;;  %691 = vmatpush3.bf16.msra.mxu1 %v732_v5 }
  0x12   : > { %692 = vmatprep.subr.bf16.mxu1 %v758_v1 }
  0x13   : > { %683 = vmatmul.mubr.msk.bf16.vlgmr.msra.gmra.mrb[0].mxu0 %vm309_vm1, %v285_v8 }
  0x14   : > { %714 = vmatprep.mubr.msk.bf16.mxu0 %vm759_vm0, %v758_v1  ;;  %707 = vmatpush3.bf16.msra.mxu0 %v738_v14 }
  0x15   : > { %693 = vmatpush3.bf16.msra.mxu1 %v733_v9  ;;  %708 = vmatprep.subr.bf16.mxu0 %v758_v1 }
  0x16   : > { %694 = vmatprep.subr.bf16.mxu1 %v758_v1 }
  0x18   : > { %709 = vmatpush3.bf16.msra.mxu0 %v739_v15 }
  0x19   : > { %695 = vmatpush3.bf16.msra.mxu1 %v734_v10  ;;  %710 = vmatprep.subr.bf16.mxu0 %v758_v1 }
  0x1a   : > { %696 = vmatprep.subr.bf16.mxu1 %v758_v1 }
  0x1c   : > { %711 = vmatpush3.bf16.msra.mxu0 %v740_v26 }
  0x1d   : > { %697 = vmatpush3.bf16.msra.mxu1 %v735_v11  ;;  %712 = vmatprep.subr.bf16.mxu0 %v758_v1 }
  0x1e   : > { %698 = vmatprep.subr.bf16.mxu1 %v758_v1 }
  0x20   : > { %713 = vmatpush3.bf16.msra.mxu0 %v741_v27 }
  0x21   : > { %699 = vmatpush3.bf16.msra.mxu1 %v736_v12 }
  0x22   : > { %700 = vmatprep.subr.bf16.mxu1 %v758_v1 }
  0x25   : > { %701 = vmatpush3.bf16.msra.mxu1 %v737_v13 }
  0xe6   : > { %v347_v17 = vpop.f32.mrb[0].mxu0 }
  0xe7   : > { %v348_v18 = vadd.f32 %v638_v16, %v347_v17  ;;  %v684_v19 = vpop.f32.mrb[1].mxu0 }
  0xe8   : > { %v350_v20 = vpop.f32.mrb[2].mxu0 }
  0xe9   : > { %v351_v21 = vadd.f32 %v638_v16, %v350_v20  ;;  %v685_v22 = vpop.f32.mrb[3].mxu0  ;;  %v354_v23 = vmax.f32 %v348_v18, 0.0 }
  0xeb   : > { %v355_v24 = vmax.f32 %v351_v21, 0.0 }
  0xed   : > { %v356_v25 = vpack.c.bf16 %v355_v24, %v354_v23 }
  0xef   : > { %703 = vmatmul.mubr.bf16.vlgmr.msra.gmra.mrb[0].mxu1 %v356_v25 }
 0x1c2   : > { %v462_v29 = vpop.f32.mrb[0].mxu1 }
 0x1c3   : > { %v463_v30 = vadd.f32 %v642_v28, %v462_v29  ;;  %v704_v31 = vpop.f32.mrb[1].mxu1 }
 0x1c4   : > { %v465_v32 = vpop.f32.mrb[2].mxu1 }
 0x1c5   : > { %v466_v33 = vadd.f32 %v642_v28, %v465_v32  ;;  %v705_v34 = vpop.f32.mrb[3].mxu1  ;;  %v469_v35 = vmax.f32 %v463_v30, 0.0 }
 0x1c7   : > { %v470_v36 = vmax.f32 %v466_v33, 0.0 }
 0x1c9   : > { %v471_v37 = vpack.c.bf16 %v470_v36, %v469_v35 }
 0x1cb   : > { %715 = vmatmul.mubr.msk.bf16.vlgmr.msra.gmra.mrb[4].mxu0 %vm511_vm2, %v471_v37 }
 0x29e   : > { %v549_v39 = vpop.f32.mrb[4].mxu0 }
 0x29f   : > { %v550_v40 = vadd.f32 %v651_v38, %v549_v39  ;;  %v716_v41 = vpop.f32.mrb[5].mxu0 }
 0x2a0   : > { %v552_v42 = vpop.f32.mrb[6].mxu0 }
 0x2a1   : > { %v657_v43 = vmul.f32 -1.442695, %v550_v40  ;;  %v553_v44 = vadd.f32 %v651_v38, %v552_v42  ;;  %v717_v45 = vpop.f32.mrb[7].mxu0 }
 0x2a3   : > { %742 = vpow2.f32 %v657_v43  ;;  %v658_v46 = vmul.f32 -1.442695, %v553_v44 }
 0x2a5   : > { %744 = vpow2.f32 %v658_v46 }
 0x2ad   : > { %v743_v47 = vpop.eup %742 }
 0x2ae   : > { %v562_v48 = vadd.f32 1.0, %v743_v47 }
 0x2af   : > { %v745_v49 = vpop.eup %744 }
 0x2b0   : > { %746 = vrcp.f32 %v562_v48  ;;  %v563_v50 = vadd.f32 1.0, %v745_v49 }
 0x2b2   : > { %748 = vrcp.f32 %v563_v50 }
 0x2ba   : > { %v747_v51 = vpop.eup %746 }
 0x2bb   : > { %v568_v52 = vadd.f32 0.5, %v747_v51 }
 0x2bc   : > { %v749_v53 = vpop.eup %748 }
 0x2bd   : > { %571 = vst.msk [vmem:[%s280_s25] sm:$0xff] %vm570_vm3, %v568_v52  ;;  %v569_v54 = vadd.f32 0.5, %v749_v53 }
 0x2bf   : > { %572 = vst.msk [vmem:[%s280_s25 + $0x8] sm:$0xff] %vm570_vm3, %v569_v54 }
 0x2c0 PF: > { %s17_s24 = sadd.s32 1, %s756_s24  }
 0x2c1   : > { %p14_p4 = scmp.ge.s32.totalorder %s17_s24, 6  }
 0x2c3   :  { %16 = sbr.rel (!%p14_p4) target bundleno = 1 (0x1), region = 78 }

</bundles_post_ra>
